<compile_context>
chip_gen: v6e
topology: v6e:2x2x1
jax: 0.10.0
libtpu: 0.0.40
codegen_flags: <defaults>
</compile_context>

<pallas_src>
import functools

import jax
import jax.numpy as jnp
from jax.experimental import pallas as pl
from jax.experimental.pallas import tpu as pltpu

LANES = 128
MAX_TILE_ROWS = 2048  # 2048 x 128 x 4B = 1 MiB per f32 input block


def _sublane_multiple(dtype) -> int:
    """Required sublane multiple for the block's second-to-last dim."""
    return {4: 8, 2: 16, 1: 32}.get(jnp.dtype(dtype).itemsize, 8)


def _dice_kernel(x_ref, t_ref, out_ref, *, total_rows, tile_rows, needs_mask):
    """Write this block's partial sums: [s*t, s, t] reduced over rows (sublanes).

    out_ref block: (1, 3, LANES) float32. Cross-lane reduction is deferred to the
    wrapper (runs once on a tiny array), so per-step work is VPU/EUP + DMA only.
    """
    x = x_ref[...].astype(jnp.float32)
    t = t_ref[...].astype(jnp.float32)

    # sigmoid(x) = 1 / (1 + exp(-x)); exp and approx reciprocal both use the EUP.
    s = pl.reciprocal(1.0 + jnp.exp(-x), approx=True)

    if needs_mask:
        # Only emitted when the last block hangs past the array (static check).
        i = pl.program_id(0)
        row = jax.lax.broadcasted_iota(jnp.int32, x.shape, 0) + i * tile_rows
        valid = row < total_rows
        s = jnp.where(valid, s, 0.0)
        t = jnp.where(valid, t, 0.0)

    out_ref[0, 0, :] = jnp.sum(s * t, axis=0)
    out_ref[0, 1, :] = jnp.sum(s, axis=0)
    out_ref[0, 2, :] = jnp.sum(t, axis=0)


def dice_loss(inputs, targets, smooth=1.0):
    assert inputs.shape == targets.shape
    n = int(inputs.size)

    x = inputs.reshape(-1)
    t = targets.reshape(-1)

    intersection = jnp.float32(0.0)
    sum_s = jnp.float32(0.0)
    sum_t = jnp.float32(0.0)

    R = n // LANES          # full rows of 128 handled by the kernel
    main = R * LANES

    if R > 0:
        sub = max(_sublane_multiple(x.dtype), _sublane_multiple(t.dtype))
        tile_rows = min(MAX_TILE_ROWS, ((R + sub - 1) // sub) * sub)
        n_blocks = pl.cdiv(R, tile_rows)
        needs_mask = (R % tile_rows) != 0

        # Free when n % 128 == 0 (slice is the identity, reshape is a bitcast);
        # otherwise costs one prefix copy — no worse than the old full jnp.pad copy.
        xm = jax.lax.slice(x, (0,), (main,)).reshape(R, LANES)
        tm = jax.lax.slice(t, (0,), (main,)).reshape(R, LANES)

        partials = pl.pallas_call(
            functools.partial(
                _dice_kernel,
                total_rows=R,
                tile_rows=tile_rows,
                needs_mask=needs_mask,
            ),
            out_shape=jax.ShapeDtypeStruct((n_blocks, 3, LANES), jnp.float32),
            grid=(n_blocks,),
            in_specs=[
                pl.BlockSpec((tile_rows, LANES), lambda i: (i, 0)),
                pl.BlockSpec((tile_rows, LANES), lambda i: (i, 0)),
            ],
            out_specs=pl.BlockSpec((1, 3, LANES), lambda i: (i, 0, 0)),
            compiler_params=pltpu.CompilerParams(
                dimension_semantics=("parallel",),  # v7x: split blocks over 2 TCs
            ),
        )(xm, tm)

        sums = jnp.sum(partials, axis=(0, 2))  # (3,)
        intersection = intersection + sums[0]
        sum_s = sum_s + sums[1]
        sum_t = sum_t + sums[2]

    if main < n:
        # Tail of fewer than 128 elements: negligible, handled with plain jnp.
        xt = jax.lax.slice(x, (main,), (n,)).astype(jnp.float32)
        tt = jax.lax.slice(t, (main,), (n,)).astype(jnp.float32)
        st = jax.nn.sigmoid(xt)
        intersection = intersection + jnp.sum(st * tt)
        sum_s = sum_s + jnp.sum(st)
        sum_t = sum_t + jnp.sum(tt)

    dice = (2.0 * intersection + smooth) / (sum_s + sum_t + smooth)
    return 1.0 - dice


def dice_loss_ref(inputs, targets, smooth=1.0):
    s = jax.nn.sigmoid(inputs.astype(jnp.float32)).reshape(-1)
    t = targets.astype(jnp.float32).reshape(-1)
    intersection = jnp.sum(s * t)
    dice = (2.0 * intersection + smooth) / (jnp.sum(s) + jnp.sum(t) + smooth)
    return 1.0 - dice


if __name__ == "__main__":
    key = jax.random.PRNGKey(0)
    k1, k2 = jax.random.split(key)
    # Small NCHW shapes consistent with a segmentation-style DiceLoss input.
    B, C, H, W = 2, 4, 16, 16
    inputs = jax.random.normal(k1, (B, C, H, W), dtype=jnp.float32)
    targets = (jax.random.uniform(k2, (B, C, H, W)) > 0.5).astype(jnp.float32)

    loss = jax.block_until_ready(dice_loss(inputs, targets, smooth=1.0))
    ref = jax.block_until_ready(dice_loss_ref(inputs, targets, smooth=1.0))

    # Tolerance accounts for the EUP approximate reciprocal used for the sigmoid.
    assert jnp.allclose(loss, ref, rtol=2e-3, atol=2e-3), (loss, ref)
    print("KERNEL_OK")
</pallas_src>

<mosaic_0001>
module attributes {stable_mosaic.version = 11 : i64} {
  func.func @_dice_kernel(%arg0: i32, %arg1: memref<16x128xf32, #tpu.memory_space<vmem>>, %arg2: memref<16x128xf32, #tpu.memory_space<vmem>>, %arg3: memref<1x3x128xf32, #tpu.memory_space<vmem>>) attributes {dimension_semantics = [#tpu.dimension_semantics<parallel>], iteration_bounds = array<i64: 1>, scalar_prefetch = 0 : i64, scratch_operands = 0 : i64, tpu.core_type = #tpu.core_type<tc>, window_params = [{transform_indices = @transform_0, window_bounds = array<i64: 16, 128>}, {transform_indices = @transform_1, window_bounds = array<i64: 16, 128>}, {transform_indices = @transform_2, window_bounds = array<i64: 1, 3, 128>}]} {
    %c0 = arith.constant 0 : index
    %c0_0 = arith.constant 0 : index
    %0 = vector.load %arg1[%c0, %c0_0] : memref<16x128xf32, #tpu.memory_space<vmem>>, vector<16x128xf32>
    %c0_1 = arith.constant 0 : index
    %c0_2 = arith.constant 0 : index
    %1 = vector.load %arg2[%c0_1, %c0_2] : memref<16x128xf32, #tpu.memory_space<vmem>>, vector<16x128xf32>
    %cst = arith.constant 0.000000e+00 : f32
    %2 = vector.broadcast %cst : f32 to vector<16x128xf32>
    %3 = arith.subf %2, %0 : vector<16x128xf32>
    %4 = math.exp %3 : vector<16x128xf32>
    %cst_3 = arith.constant 1.000000e+00 : f32
    %5 = vector.broadcast %cst_3 : f32 to vector<16x128xf32>
    %6 = arith.addf %5, %4 : vector<16x128xf32>
    %7 = tpu.reciprocal %6 {approx = true} : vector<16x128xf32> -> vector<16x128xf32>
    %8 = arith.mulf %7, %1 : vector<16x128xf32>
    %cst_4 = arith.constant dense<0.000000e+00> : vector<128xf32>
    %9 = vector.multi_reduction <add>, %8, %cst_4 [0] : vector<16x128xf32> to vector<128xf32>
    %c0_5 = arith.constant 0 : index
    %c0_6 = arith.constant 0 : index
    %c0_7 = arith.constant 0 : index
    %10 = vector.load %arg3[%c0_5, %c0_6, %c0_7] : memref<1x3x128xf32, #tpu.memory_space<vmem>>, vector<1x1x128xf32>
    %11 = vector.shape_cast %10 : vector<1x1x128xf32> to vector<128xf32>
    %12 = vector.shape_cast %9 : vector<128xf32> to vector<1x1x128xf32>
    tpu.vector_store %arg3[%c0_5, %c0_6, %c0_7], %12 {strides = array<i32>} : memref<1x3x128xf32, #tpu.memory_space<vmem>>, vector<1x1x128xf32>,
    %cst_8 = arith.constant dense<0.000000e+00> : vector<128xf32>
    %13 = vector.multi_reduction <add>, %7, %cst_8 [0] : vector<16x128xf32> to vector<128xf32>
    %c0_9 = arith.constant 0 : index
    %c1 = arith.constant 1 : index
    %c0_10 = arith.constant 0 : index
    %14 = vector.load %arg3[%c0_9, %c1, %c0_10] : memref<1x3x128xf32, #tpu.memory_space<vmem>>, vector<1x1x128xf32>
    %15 = vector.shape_cast %14 : vector<1x1x128xf32> to vector<128xf32>
    %16 = vector.shape_cast %13 : vector<128xf32> to vector<1x1x128xf32>
    tpu.vector_store %arg3[%c0_9, %c1, %c0_10], %16 {strides = array<i32>} : memref<1x3x128xf32, #tpu.memory_space<vmem>>, vector<1x1x128xf32>,
    %cst_11 = arith.constant dense<0.000000e+00> : vector<128xf32>
    %17 = vector.multi_reduction <add>, %1, %cst_11 [0] : vector<16x128xf32> to vector<128xf32>
    %c0_12 = arith.constant 0 : index
    %c2 = arith.constant 2 : index
    %c0_13 = arith.constant 0 : index
    %18 = vector.load %arg3[%c0_12, %c2, %c0_13] : memref<1x3x128xf32, #tpu.memory_space<vmem>>, vector<1x1x128xf32>
    %19 = vector.shape_cast %18 : vector<1x1x128xf32> to vector<128xf32>
    %20 = vector.shape_cast %17 : vector<128xf32> to vector<1x1x128xf32>
    tpu.vector_store %arg3[%c0_12, %c2, %c0_13], %20 {strides = array<i32>} : memref<1x3x128xf32, #tpu.memory_space<vmem>>, vector<1x1x128xf32>,
    return
  }
  func.func @transform_0(%arg0: i32) -> (i32, i32) {
    %c0_i32 = arith.constant 0 : i32
    %c0_i32_0 = arith.constant 0 : i32
    return %arg0, %c0_i32 : i32, i32
  }
  func.func @transform_1(%arg0: i32) -> (i32, i32) {
    %c0_i32 = arith.constant 0 : i32
    %c0_i32_0 = arith.constant 0 : i32
    return %arg0, %c0_i32 : i32, i32
  }
  func.func @transform_2(%arg0: i32) -> (i32, i32, i32) {
    %c0_i32 = arith.constant 0 : i32
    %c0_i32_0 = arith.constant 0 : i32
    %c0_i32_1 = arith.constant 0 : i32
    return %arg0, %c0_i32, %c0_i32_0 : i32, i32, i32
  }
}

</mosaic_0001>

<bundles_post_ra>
// kernel: tpu_custom_call.1
= control target key start
LH: loop header
LB: loop body
LE: loop exit
PB: predicated region body
PF: predicated region fallthrough
CT: control target
= control target key end

     0   :  { %7 = vsyncpa [#allocation3], 0  ;;  %s175_s0 = inlined_call_operand.hbm [shape: f32[16,128], index: 0, kind: input, shape index: {}]   ;;  %s176_s1 = inlined_call_operand.hbm [shape: f32[16,128], index: 1, kind: input, shape index: {}]   ;;  %s177_s2 = inlined_call_operand.vmem [shape: f32[1,3,128], index: 2, kind: output, shape index: {}]  }
   0x1   :  { %8 = vsyncpa [#allocation5], 0  ;;  %s141_s9 = smov [#allocation2]  }
   0x2   :  { %s14_s10 = sshll.u32 %s141_s9, 4  ;;  %s15_s10 = int_to_ptr.vmem [resolvable:$true] %s14_s10 }
   0x3   :  { %s105_s11 = scalar_lea.vmem %s15_s10, 256  ;;  %p110_p1 = scmp.lt.s32.totalorder %s15_s10, %s15_s10 }
   0x4   :  { %p106_p0 = scmp.ne.s32.totalorder %s15_s10, %s105_s11  ;;  %p111_p2 = scmp.lt.s32.totalorder %s105_s11, %s105_s11 }
   0x6   :  { %p112_p3 = por %p111_p2, %p110_p1 }
   0x8   :  { %p113_p4 = pnand %p112_p3, %p106_p0 }
   0xa   :  { %116 = shalt.err (!%p113_p4)
}
   0xb   :  { %s142_s12 = smov 128   ;;  %s143_s13 = smov 8  }
   0xc   :  { %20 = dma.hbm_to_vmem [thread:$0]  %s175_s0, 256, %s15_s10, [#allocation3], %s142_s12, %s142_s12, %s143_s13  }
   0xd   :  { %s144_s16 = smov [#allocation4]  }
   0xe   :  { %s26_s17 = sshll.u32 %s144_s16, 4  ;;  %s27_s17 = int_to_ptr.vmem [resolvable:$true] %s26_s17 }
   0xf   :  { %s125_s18 = scalar_lea.vmem %s27_s17, 256  ;;  %p130_p6 = scmp.lt.s32.totalorder %s27_s17, %s27_s17 }
  0x10   :  { %p126_p5 = scmp.ne.s32.totalorder %s27_s17, %s125_s18  ;;  %p131_p7 = scmp.lt.s32.totalorder %s125_s18, %s125_s18 }
  0x12   :  { %p132_p8 = por %p131_p7, %p130_p6 }
  0x14   :  { %p133_p9 = pnand %p132_p8, %p126_p5 }
  0x16   :  { %136 = shalt.err (!%p133_p9)
}
  0x17   :  { %32 = dma.hbm_to_vmem [thread:$0]  %s176_s1, 256, %s27_s17, [#allocation5], %s142_s12, %s142_s12, %s143_s13  }
  0x18   :  { %137 = dma.done.wait [#allocation3], 256  }
  0x19   :  { %138 = vsyncadd [#allocation3], 4294967040 }
  0x1a   :  { %139 = dma.done.wait [#allocation5], 256  }
  0x1b   :  { %140 = vsyncadd [#allocation5], 4294967040  ;;  %v39_v0 = vld [vmem:[#allocation2] sm:$0xff]  ;;  %v40_v1 = vld [vmem:[#allocation2 + $0x8] sm:$0xff] }
  0x1c   :  { %v41_v2 = vld [vmem:[#allocation4] sm:$0xff]  ;;  %v42_v3 = vld [vmem:[#allocation4 + $0x8] sm:$0xff]  ;;  %v43_v4 = vsub.f32 0.0, %v39_v0  ;;  %v44_v5 = vsub.f32 0.0, %v40_v1 }
  0x1d   :  { %v71_v6 = vadd.f32 %v42_v3, %v41_v2 }
  0x1e   :  { %v45_v7 = vmul.f32 1.442695, %v43_v4  ;;  %v47_v8 = vmul.f32 1.442695, %v44_v5 }
  0x1f   :  { %v72_v9 = vrot.slane %v71_v6, 4 }
  0x20   :  { %89 = vpow2.f32 %v45_v7 }
  0x21   :  { %91 = vpow2.f32 %v47_v8  ;;  %v73_v10 = vadd.f32 %v72_v9, %v71_v6 }
  0x23   :  { %v74_v11 = vrot.slane %v73_v10, 2 }
  0x25   :  { %v75_v12 = vadd.f32 %v74_v11, %v73_v10 }
  0x27   :  { %v76_v13 = vrot.slane %v75_v12, 1 }
  0x29   :  { %v77_v14 = vadd.f32 %v76_v13, %v75_v12 }
  0x2b   :  { %78 = vst [vmem:[%s177_s2 + $0x2] sm:$0x1] %v77_v14 }
  0x2d   :  { %v90_v15 = vpop.eup %89 }
  0x2e   :  { %v92_v16 = vpop.eup %91  ;;  %v49_v17 = vadd.f32 1.0, %v90_v15 }
  0x2f   :  { %v50_v18 = vadd.f32 1.0, %v92_v16 }
  0x30   :  { %93 = vrcp.f32 %v49_v17 }
  0x31   :  { %95 = vrcp.f32 %v50_v18 }
  0x3d   :  { %v94_v19 = vpop.eup %93 }
  0x3e   :  { %v96_v20 = vpop.eup %95  ;;  %v53_v21 = vmul.f32 %v94_v19, %v41_v2 }
  0x3f   :  { %v54_v22 = vmul.f32 %v96_v20, %v42_v3  ;;  %v63_v23 = vadd.f32 %v96_v20, %v94_v19 }
  0x41   :  { %v55_v24 = vadd.f32 %v54_v22, %v53_v21  ;;  %v64_v25 = vrot.slane %v63_v23, 4 }
  0x43   :  { %v56_v26 = vrot.slane %v55_v24, 4  ;;  %v65_v27 = vadd.f32 %v64_v25, %v63_v23 }
  0x45   :  { %v57_v28 = vadd.f32 %v56_v26, %v55_v24  ;;  %v66_v29 = vrot.slane %v65_v27, 2 }
  0x47   :  { %v58_v30 = vrot.slane %v57_v28, 2  ;;  %v67_v31 = vadd.f32 %v66_v29, %v65_v27 }
  0x49   :  { %v59_v32 = vadd.f32 %v58_v30, %v57_v28  ;;  %v68_v33 = vrot.slane %v67_v31, 1 }
  0x4b   :  { %v60_v34 = vrot.slane %v59_v32, 1  ;;  %v69_v35 = vadd.f32 %v68_v33, %v67_v31 }
  0x4d   :  { %v61_v36 = vadd.f32 %v60_v34, %v59_v32  ;;  %70 = vst [vmem:[%s177_s2 + $0x1] sm:$0x1] %v69_v35 }
  0x4f   :  { %62 = vst [vmem:[%s177_s2] sm:$0x1] %v61_v36 }
  0x50   :  { %83 = vsyncpa [#allocation3], 1 }
  0x51   :  { %84 = vsyncpa [#allocation5], 1 }

</bundles_post_ra>
